<compile_context>
chip_gen: v7x
topology: tpu7x:2x2x1
jax: 0.10.0
libtpu: 0.0.40
codegen_flags: <defaults>
</compile_context>

<pallas_src>
import math

import jax
import jax.numpy as jnp
import numpy as np
from jax import lax
from jax.experimental import pallas as pl
from jax.experimental.pallas import tpu as pltpu


def _make_kernel(*, K, num_layers, c_ins, c_outs, out_size, half, A, A_pad,
                 slot_rows, compute_dtype):
    """One grid step processes a batch tile of TB elements (lanes = TB * L)."""
    cdt = compute_dtype

    def kernel(x_ref, p_ref, o_ref):
        W = x_ref.shape[1]                        # TB * L (static)
        ones_w = jnp.ones((1, W), jnp.float32)

        def stacked(v, taps):
            # Row block j of the result holds v rotated so column c reads v[:, c+j]
            # (mod W).  The wrap only lands in columns that are never read by a
            # valid output (t >= valid length of that layer / batch block edge).
            pieces = [v if j == 0 else pltpu.roll(v, shift=(-j) % W, axis=1)
                      for j in range(taps)]
            return jnp.concatenate(pieces + [ones_w], axis=0)   # (taps*rows+1, W)

        cur = x_ref[...].astype(jnp.float32)      # (A, W)

        # ---- TCN stack: ONE batch-fused im2col matmul per layer -----------------
        slot = 0
        for i in range(num_layers):
            ci, co = c_ins[i], c_outs[i]
            ncols = K * ci + 1                    # +1 = folded bias (ones row)
            xcat = stacked(cur, K).astype(cdt)    # (K*ci+1, W)
            w_aug = p_ref[slot * slot_rows:slot * slot_rows + co, 0:ncols]
            acc = jnp.dot(w_aug, xcat, preferred_element_type=jnp.float32)  # (co, W)
            cur = jnp.maximum(acc, 0.0) if i < num_layers - 1 else acc
            slot += 1

        # cur: (1, W) f32; valid conv outputs sit at columns b*L + t, t < out_size.
        # ---- head Linear(out_size->half) as an out_size-tap "conv" --------------
        xcat = stacked(cur, out_size).astype(cdt)                # (out_size+1, W)
        w1 = p_ref[slot * slot_rows:slot * slot_rows + half, 0:out_size + 1]
        h = jnp.maximum(jnp.dot(w1, xcat, preferred_element_type=jnp.float32), 0.0)
        slot += 1                                                # Dropout: eval no-op

        # ---- head Linear(half->A); asset rows padded to A_pad (zero weight rows) -
        xcat = jnp.concatenate([h, ones_w], axis=0).astype(cdt)  # (half+1, W)
        w2 = p_ref[slot * slot_rows:slot * slot_rows + A_pad, 0:half + 1]
        logits = jnp.dot(w2, xcat, preferred_element_type=jnp.float32)  # (A_pad, W)

        # ---- softmax over assets + centering + L1 normalization (f32) -----------
        row_mask = lax.broadcasted_iota(jnp.int32, (A_pad, 1), 0) < A
        lg = jnp.where(row_mask, logits, jnp.float32(-1e30))
        m = jnp.max(lg, axis=0, keepdims=True)
        e = jnp.exp(lg - m)                                       # pad rows -> 0
        p = e * pl.reciprocal(jnp.sum(e, axis=0, keepdims=True), approx=True)
        cen = p - jnp.sum(p, axis=0, keepdims=True) * (1.0 / A)
        cen = jnp.where(row_mask, cen, 0.0)
        denom = jnp.sum(jnp.abs(cen), axis=0, keepdims=True)
        # Exact divide for the L1 norm; the tiny floor only protects garbage /
        # padded columns (which the wrapper slices away) from producing inf/NaN.
        o_ref[...] = cen / jnp.maximum(denom, jnp.float32(1e-30))

    return kernel


def _choose_batch_tile(B, L):
    """Batch tile TB such that TB*L is a multiple of 128 (lane dense)."""
    unit = 128 // math.gcd(L, 128)
    max_lanes = 16 * 1024                       # per-step lane cap (~ a few MiB live)
    cap_units = max(1, min(max_lanes // max(L, 1), 1024) // unit)
    need_units = -(-B // unit)
    if need_units >= 2:
        # Prefer >= 2 grid steps so both v7x TensorCores get work.
        tb_units = min(cap_units, -(-need_units // 2))
    else:
        tb_units = 1
    return unit * tb_units


def time_series_model_forward(x_bla, conv_params, lin1, lin2, *, kernel_size,
                              num_layers, compute_dtype=jnp.bfloat16):
    """x_bla: (B, L, A) exactly like the PyTorch module's input.  Returns (B, A)."""
    B, L, A = x_bla.shape
    K = kernel_size
    assert len(conv_params) == num_layers
    c_ins = [int(w.shape[1]) for (w, _) in conv_params]
    c_outs = [int(w.shape[0]) for (w, _) in conv_params]
    assert c_outs[-1] == 1, "last TCN layer must have a single output channel"
    w1, b1 = lin1
    w2, b2 = lin2
    half, out_size = int(w1.shape[0]), int(w1.shape[1])
    # Lane-wrap safety of the in-kernel im2col rolls relies on this relation:
    # every value a valid output reads stays inside its own L-lane batch block.
    assert out_size == L - (K - 1) * num_layers and out_size <= L

    A_pad = max(8, ((A + 7) // 8) * 8)

    TB = _choose_batch_tile(B, L)
    B_pad = -(-B // TB) * TB
    nb = B_pad // TB
    W_tile = TB * L
    assert W_tile % 128 == 0

    # ---- input: lane-dense (A, B_pad*L) slab in compute dtype (one fused pass) ----
    x_t = jnp.transpose(x_bla, (2, 0, 1))                        # (A, B, L)
    if B_pad != B:
        x_t = jnp.pad(x_t, ((0, 0), (0, B_pad - B), (0, 0)))
    x2d = x_t.reshape(A, B_pad * L).astype(compute_dtype)

    # ---- pack every weight + bias into ONE slab: one DMA, one BlockSpec -----------
    blocks = []
    for (w, b) in conv_params:                                   # w: (co, ci, K)
        co, ci, _ = w.shape
        wr = jnp.transpose(w, (0, 2, 1)).reshape(co, K * ci)     # (k, ci)-minor order
        blocks.append(jnp.concatenate([wr, b[:, None]], axis=1))
    blocks.append(jnp.concatenate([w1, b1[:, None]], axis=1))    # (half, out_size+1)
    blocks.append(jnp.concatenate([w2, b2[:, None]], axis=1))    # (A, half+1)
    max_rows = max(blk.shape[0] for blk in blocks)
    slot_rows = ((max(max_rows, A_pad) + 15) // 16) * 16         # tile-aligned slots
    assert all(blk.shape[1] <= 128 for blk in blocks)
    slab = jnp.zeros((len(blocks) * slot_rows, 128), jnp.float32)
    for s, blk in enumerate(blocks):
        r, c = blk.shape
        slab = slab.at[s * slot_rows:s * slot_rows + r, :c].set(blk.astype(jnp.float32))
    slab = slab.astype(compute_dtype)

    kernel = _make_kernel(K=K, num_layers=num_layers, c_ins=c_ins, c_outs=c_outs,
                          out_size=out_size, half=half, A=A, A_pad=A_pad,
                          slot_rows=slot_rows, compute_dtype=compute_dtype)

    out = pl.pallas_call(
        kernel,
        out_shape=jax.ShapeDtypeStruct((A_pad, B_pad * L), jnp.float32),
        grid=(nb,),
        in_specs=[pl.BlockSpec((A, W_tile), lambda i: (0, i)),
                  pl.BlockSpec(slab.shape, lambda i: (0, 0))],
        out_specs=pl.BlockSpec((A_pad, W_tile), lambda i: (0, i)),
        compiler_params=pltpu.CompilerParams(
            dimension_semantics=("parallel",),
            vmem_limit_bytes=32 * 1024 * 1024),
    )(x2d, slab)

    # Answers live at columns b*L (t == 0); tiny wrapper-side strided slice.
    res = out[:A, :].reshape(A, B_pad, L)[:, :B, 0]              # (A, B)
    return res.T                                                 # (B, A)


def _reference_forward(x_bla, conv_params, lin1, lin2, *, kernel_size, num_layers,
                       dot_dtype=jnp.float32):
    """Pure-JAX mirror of the PyTorch forward (eval mode).  `dot_dtype` sets the dtype
    of every matmul input (weights, biases, activations); f32 accumulation always."""
    hi = jax.lax.Precision.HIGHEST
    c = lambda a: a.astype(dot_dtype)
    cur = jnp.transpose(x_bla, (0, 2, 1))                        # (B, C, L)
    for i, (w, b) in enumerate(conv_params):                     # w: (co, ci, K)
        l_out = cur.shape[-1] - kernel_size + 1
        acc = sum(jnp.einsum('oc,bcl->bol', c(w[:, :, k]), c(cur[:, :, k:k + l_out]),
                             preferred_element_type=jnp.float32, precision=hi)
                  for k in range(kernel_size))
        acc = acc + c(b).astype(jnp.float32)[None, :, None]
        cur = jnp.maximum(acc, 0.0) if i < num_layers - 1 else acc
    seq = cur[:, 0, :]                                           # squeeze -> (B, out_size)
    w1, b1 = lin1
    w2, b2 = lin2
    h = jnp.maximum(jnp.einsum('bi,oi->bo', c(seq), c(w1),
                               preferred_element_type=jnp.float32, precision=hi)
                    + c(b1).astype(jnp.float32)[None, :], 0.0)
    logits = (jnp.einsum('bi,oi->bo', c(h), c(w2),
                         preferred_element_type=jnp.float32, precision=hi)
              + c(b2).astype(jnp.float32)[None, :])
    p = jax.nn.softmax(logits, axis=1)
    cc = p - p.mean(axis=1, keepdims=True)
    return cc / jnp.abs(cc).sum(axis=1, keepdims=True)


if __name__ == "__main__":
    B, L, A = 2, 16, 4               # batch, input_length, assets_num
    K, num_layers, hidden = 3, 2, 8
    out_size = L - (K - 1) * num_layers          # 12
    half = out_size // 2                          # 6

    key = jax.random.PRNGKey(0)
    ks = jax.random.split(key, 16)
    x = jax.random.normal(ks[0], (B, L, A), jnp.float32)

    # Conv stack: A -> hidden -> ... -> 1
    c_ins = [A] + [hidden] * (num_layers - 1)
    c_outs = [hidden] * (num_layers - 1) + [1]
    conv_params = []
    for i, (ci, co) in enumerate(zip(c_ins, c_outs)):
        w = 0.3 * jax.random.normal(ks[1 + 2 * i], (co, ci, K), jnp.float32)
        b = 0.1 * jax.random.normal(ks[2 + 2 * i], (co,), jnp.float32)
        conv_params.append((w, b))

    lin1 = (0.3 * jax.random.normal(ks[10], (half, out_size), jnp.float32),
            0.1 * jax.random.normal(ks[11], (half,), jnp.float32))
    lin2 = (0.3 * jax.random.normal(ks[12], (A, half), jnp.float32),
            0.1 * jax.random.normal(ks[13], (A,), jnp.float32))

    # Shipped path: bf16 MXU inputs, f32 accumulation / f32 elementwise tail.
    y = time_series_model_forward(x, conv_params, lin1, lin2, kernel_size=K,
                                  num_layers=num_layers, compute_dtype=jnp.bfloat16)
    y = jax.block_until_ready(y)
    y_ref_bf16 = _reference_forward(x, conv_params, lin1, lin2, kernel_size=K,
                                    num_layers=num_layers, dot_dtype=jnp.bfloat16)
    y_ref_bf16 = jax.block_until_ready(y_ref_bf16)

    # Same kernel with f32 matmul inputs: validates the structure at full precision.
    y32 = time_series_model_forward(x, conv_params, lin1, lin2, kernel_size=K,
                                    num_layers=num_layers, compute_dtype=jnp.float32)
    y32 = jax.block_until_ready(y32)
    y_ref_f32 = _reference_forward(x, conv_params, lin1, lin2, kernel_size=K,
                                   num_layers=num_layers, dot_dtype=jnp.float32)
    y_ref_f32 = jax.block_until_ready(y_ref_f32)

    assert y.shape == (B, A) and y32.shape == (B, A)
    assert np.all(np.isfinite(np.asarray(y)))
    assert np.all(np.isfinite(np.asarray(y32)))
    np.testing.assert_allclose(np.asarray(y), np.asarray(y_ref_bf16),
                               atol=5e-3, rtol=5e-3)
    np.testing.assert_allclose(np.asarray(y32), np.asarray(y_ref_f32),
                               atol=5e-3, rtol=5e-3)
    print("KERNEL_OK")
</pallas_src>

<mosaic_0001>
module attributes {stable_mosaic.version = 11 : i64} {
  func.func @kernel(%arg0: i32, %arg1: memref<4x128xbf16, #tpu.memory_space<vmem>>, %arg2: memref<64x128xbf16, #tpu.memory_space<vmem>>, %arg3: memref<8x128xf32, #tpu.memory_space<vmem>>) attributes {dimension_semantics = [#tpu.dimension_semantics<parallel>], iteration_bounds = array<i64: 1>, scalar_prefetch = 0 : i64, scratch_operands = 0 : i64, tpu.core_type = #tpu.core_type<tc>, window_params = [{transform_indices = @transform_0, window_bounds = array<i64: 4, 128>}, {pipeline_mode = #tpu.pipeline_mode<synchronous>, transform_indices = @transform_1, window_bounds = array<i64: 64, 128>}, {transform_indices = @transform_2, window_bounds = array<i64: 8, 128>}]} {
    %cst = arith.constant 1.000000e+00 : f32
    %0 = vector.broadcast %cst : f32 to vector<1x128xf32>
    %c0 = arith.constant 0 : index
    %c0_0 = arith.constant 0 : index
    %1 = vector.load %arg1[%c0, %c0_0] : memref<4x128xbf16, #tpu.memory_space<vmem>>, vector<4x128xbf16>
    %2 = arith.extf %1 : vector<4x128xbf16> to vector<4x128xf32>
    %c127_i32 = arith.constant 127 : i32
    %3 = tpu.dynamic_rotate %2 by %c127_i32 dim 1 : vector<4x128xf32>, i32 -> vector<4x128xf32>
    %c126_i32 = arith.constant 126 : i32
    %4 = tpu.dynamic_rotate %2 by %c126_i32 dim 1 : vector<4x128xf32>, i32 -> vector<4x128xf32>
    %5 = tpu.concatenate %2, %3, %4, %0 in 0 : vector<4x128xf32>, vector<4x128xf32>, vector<4x128xf32>, vector<1x128xf32> -> vector<13x128xf32>
    %6 = arith.truncf %5 : vector<13x128xf32> to vector<13x128xbf16>
    %c0_1 = arith.constant 0 : index
    %c0_2 = arith.constant 0 : index
    %7 = vector.load %arg2[%c0_1, %c0_2] : memref<64x128xbf16, #tpu.memory_space<vmem>>, vector<8x13xbf16>
    %cst_3 = arith.constant dense<0.000000e+00> : vector<8x128xf32>
    %8 = tpu.matmul %7, %6, %cst_3 {dimension_numbers = #tpu.dot_dimension_numbers<[1], [0], [0], [1], [0, 0, 1, 1], [], []>} : vector<8x13xbf16>, vector<13x128xbf16>, vector<8x128xf32> -> vector<8x128xf32>
    %cst_4 = arith.constant 0.000000e+00 : f32
    %9 = vector.broadcast %cst_4 : f32 to vector<8x128xf32>
    %10 = arith.maximumf %8, %9 : vector<8x128xf32>
    %c127_i32_5 = arith.constant 127 : i32
    %11 = tpu.dynamic_rotate %10 by %c127_i32_5 dim 1 : vector<8x128xf32>, i32 -> vector<8x128xf32>
    %c126_i32_6 = arith.constant 126 : i32
    %12 = tpu.dynamic_rotate %10 by %c126_i32_6 dim 1 : vector<8x128xf32>, i32 -> vector<8x128xf32>
    %13 = tpu.concatenate %10, %11, %12, %0 in 0 : vector<8x128xf32>, vector<8x128xf32>, vector<8x128xf32>, vector<1x128xf32> -> vector<25x128xf32>
    %14 = arith.truncf %13 : vector<25x128xf32> to vector<25x128xbf16>
    %c16 = arith.constant 16 : index
    %c0_7 = arith.constant 0 : index
    %15 = vector.load %arg2[%c16, %c0_7] : memref<64x128xbf16, #tpu.memory_space<vmem>>, vector<1x25xbf16>
    %cst_8 = arith.constant dense<0.000000e+00> : vector<1x128xf32>
    %16 = tpu.matmul %15, %14, %cst_8 {dimension_numbers = #tpu.dot_dimension_numbers<[1], [0], [0], [1], [0, 0, 1, 1], [], []>} : vector<1x25xbf16>, vector<25x128xbf16>, vector<1x128xf32> -> vector<1x128xf32>
    %c127_i32_9 = arith.constant 127 : i32
    %17 = tpu.dynamic_rotate %16 by %c127_i32_9 dim 1 : vector<1x128xf32>, i32 -> vector<1x128xf32>
    %c126_i32_10 = arith.constant 126 : i32
    %18 = tpu.dynamic_rotate %16 by %c126_i32_10 dim 1 : vector<1x128xf32>, i32 -> vector<1x128xf32>
    %c125_i32 = arith.constant 125 : i32
    %19 = tpu.dynamic_rotate %16 by %c125_i32 dim 1 : vector<1x128xf32>, i32 -> vector<1x128xf32>
    %c124_i32 = arith.constant 124 : i32
    %20 = tpu.dynamic_rotate %16 by %c124_i32 dim 1 : vector<1x128xf32>, i32 -> vector<1x128xf32>
    %c123_i32 = arith.constant 123 : i32
    %21 = tpu.dynamic_rotate %16 by %c123_i32 dim 1 : vector<1x128xf32>, i32 -> vector<1x128xf32>
    %c122_i32 = arith.constant 122 : i32
    %22 = tpu.dynamic_rotate %16 by %c122_i32 dim 1 : vector<1x128xf32>, i32 -> vector<1x128xf32>
    %c121_i32 = arith.constant 121 : i32
    %23 = tpu.dynamic_rotate %16 by %c121_i32 dim 1 : vector<1x128xf32>, i32 -> vector<1x128xf32>
    %c120_i32 = arith.constant 120 : i32
    %24 = tpu.dynamic_rotate %16 by %c120_i32 dim 1 : vector<1x128xf32>, i32 -> vector<1x128xf32>
    %c119_i32 = arith.constant 119 : i32
    %25 = tpu.dynamic_rotate %16 by %c119_i32 dim 1 : vector<1x128xf32>, i32 -> vector<1x128xf32>
    %c118_i32 = arith.constant 118 : i32
    %26 = tpu.dynamic_rotate %16 by %c118_i32 dim 1 : vector<1x128xf32>, i32 -> vector<1x128xf32>
    %c117_i32 = arith.constant 117 : i32
    %27 = tpu.dynamic_rotate %16 by %c117_i32 dim 1 : vector<1x128xf32>, i32 -> vector<1x128xf32>
    %28 = tpu.concatenate %16, %17, %18, %19, %20, %21, %22, %23, %24, %25, %26, %27, %0 in 0 : vector<1x128xf32>, vector<1x128xf32>, vector<1x128xf32>, vector<1x128xf32>, vector<1x128xf32>, vector<1x128xf32>, vector<1x128xf32>, vector<1x128xf32>, vector<1x128xf32>, vector<1x128xf32>, vector<1x128xf32>, vector<1x128xf32>, vector<1x128xf32> -> vector<13x128xf32>
    %29 = arith.truncf %28 : vector<13x128xf32> to vector<13x128xbf16>
    %c32 = arith.constant 32 : index
    %c0_11 = arith.constant 0 : index
    %30 = vector.load %arg2[%c32, %c0_11] : memref<64x128xbf16, #tpu.memory_space<vmem>>, vector<6x13xbf16>
    %cst_12 = arith.constant dense<0.000000e+00> : vector<6x128xf32>
    %31 = tpu.matmul %30, %29, %cst_12 {dimension_numbers = #tpu.dot_dimension_numbers<[1], [0], [0], [1], [0, 0, 1, 1], [], []>} : vector<6x13xbf16>, vector<13x128xbf16>, vector<6x128xf32> -> vector<6x128xf32>
    %cst_13 = arith.constant 0.000000e+00 : f32
    %32 = vector.broadcast %cst_13 : f32 to vector<6x128xf32>
    %33 = arith.maximumf %31, %32 : vector<6x128xf32>
    %34 = tpu.concatenate %33, %0 in 0 : vector<6x128xf32>, vector<1x128xf32> -> vector<7x128xf32>
    %35 = arith.truncf %34 : vector<7x128xf32> to vector<7x128xbf16>
    %c48 = arith.constant 48 : index
    %c0_14 = arith.constant 0 : index
    %36 = vector.load %arg2[%c48, %c0_14] : memref<64x128xbf16, #tpu.memory_space<vmem>>, vector<8x7xbf16>
    %cst_15 = arith.constant dense<0.000000e+00> : vector<8x128xf32>
    %37 = tpu.matmul %36, %35, %cst_15 {dimension_numbers = #tpu.dot_dimension_numbers<[1], [0], [0], [1], [0, 0, 1, 1], [], []>} : vector<8x7xbf16>, vector<7x128xbf16>, vector<8x128xf32> -> vector<8x128xf32>
    %38 = tpu.iota {dimensions = array<i32: 0>} : vector<8x1xi32>
    %c4_i32 = arith.constant 4 : i32
    %39 = vector.broadcast %c4_i32 : i32 to vector<8x1xi32>
    %40 = arith.cmpi slt, %38, %39 : vector<8x1xi32>
    %cst_16 = arith.constant -1.000000e+30 : f32
    %41 = vector.shape_cast %40 : vector<8x1xi1> to vector<8x1xi1>
    %42 = vector.broadcast %41 : vector<8x1xi1> to vector<8x128xi1>
    %43 = vector.broadcast %cst_16 : f32 to vector<8x128xf32>
    %44 = arith.select %42, %37, %43 : vector<8x128xi1>, vector<8x128xf32>
    %cst_17 = arith.constant dense<0xFF800000> : vector<128xf32>
    %45 = vector.multi_reduction <maximumf>, %44, %cst_17 [0] : vector<8x128xf32> to vector<128xf32>
    %46 = vector.shape_cast %45 : vector<128xf32> to vector<1x128xf32>
    %47 = vector.broadcast %46 : vector<1x128xf32> to vector<8x128xf32>
    %48 = arith.subf %44, %47 : vector<8x128xf32>
    %49 = math.exp %48 : vector<8x128xf32>
    %cst_18 = arith.constant dense<0.000000e+00> : vector<128xf32>
    %50 = vector.multi_reduction <add>, %49, %cst_18 [0] : vector<8x128xf32> to vector<128xf32>
    %51 = vector.shape_cast %50 : vector<128xf32> to vector<1x128xf32>
    %52 = tpu.reciprocal %51 {approx = true} : vector<1x128xf32> -> vector<1x128xf32>
    %53 = vector.broadcast %52 : vector<1x128xf32> to vector<8x128xf32>
    %54 = arith.mulf %49, %53 : vector<8x128xf32>
    %cst_19 = arith.constant dense<0.000000e+00> : vector<128xf32>
    %55 = vector.multi_reduction <add>, %54, %cst_19 [0] : vector<8x128xf32> to vector<128xf32>
    %56 = vector.shape_cast %55 : vector<128xf32> to vector<1x128xf32>
    %cst_20 = arith.constant 2.500000e-01 : f32
    %57 = vector.broadcast %cst_20 : f32 to vector<1x128xf32>
    %58 = arith.mulf %56, %57 : vector<1x128xf32>
    %59 = vector.broadcast %58 : vector<1x128xf32> to vector<8x128xf32>
    %60 = arith.subf %54, %59 : vector<8x128xf32>
    %cst_21 = arith.constant 0.000000e+00 : f32
    %61 = vector.shape_cast %40 : vector<8x1xi1> to vector<8x1xi1>
    %62 = vector.broadcast %61 : vector<8x1xi1> to vector<8x128xi1>
    %63 = vector.broadcast %cst_21 : f32 to vector<8x128xf32>
    %64 = arith.select %62, %60, %63 : vector<8x128xi1>, vector<8x128xf32>
    %65 = math.absf %64 : vector<8x128xf32>
    %cst_22 = arith.constant dense<0.000000e+00> : vector<128xf32>
    %66 = vector.multi_reduction <add>, %65, %cst_22 [0] : vector<8x128xf32> to vector<128xf32>
    %67 = vector.shape_cast %66 : vector<128xf32> to vector<1x128xf32>
    %cst_23 = arith.constant 1.000000e-30 : f32
    %68 = vector.broadcast %cst_23 : f32 to vector<1x128xf32>
    %69 = arith.maximumf %67, %68 : vector<1x128xf32>
    %70 = vector.broadcast %69 : vector<1x128xf32> to vector<8x128xf32>
    %71 = arith.divf %64, %70 : vector<8x128xf32>
    %c0_24 = arith.constant 0 : index
    %c0_25 = arith.constant 0 : index
    %72 = vector.load %arg3[%c0_24, %c0_25] : memref<8x128xf32, #tpu.memory_space<vmem>>, vector<8x128xf32>
    tpu.vector_store %arg3[%c0_24, %c0_25], %71 {strides = array<i32>} : memref<8x128xf32, #tpu.memory_space<vmem>>, vector<8x128xf32>,
    return
  }
  func.func @transform_0(%arg0: i32) -> (i32, i32) {
    %c0_i32 = arith.constant 0 : i32
    %c0_i32_0 = arith.constant 0 : i32
    return %c0_i32, %arg0 : i32, i32
  }
  func.func @transform_1(%arg0: i32) -> (i32, i32) {
    %c0_i32 = arith.constant 0 : i32
    %c0_i32_0 = arith.constant 0 : i32
    %c0_i32_1 = arith.constant 0 : i32
    return %c0_i32, %c0_i32_0 : i32, i32
  }
  func.func @transform_2(%arg0: i32) -> (i32, i32) {
    %c0_i32 = arith.constant 0 : i32
    %c0_i32_0 = arith.constant 0 : i32
    return %c0_i32, %arg0 : i32, i32
  }
}

</mosaic_0001>

<bundles_post_ra>
// kernel: tpu_custom_call.1
= control target key start
LH: loop header
LB: loop body
LE: loop exit
PB: predicated region body
PF: predicated region fallthrough
CT: control target
= control target key end

     0   :  { %7 = vsyncpa [#allocation3], 0  ;;  %s642_s0 = inlined_call_operand.hbm [shape: bf16[4,128], index: 0, kind: input, shape index: {}]   ;;  %s643_s1 = inlined_call_operand.hbm [shape: bf16[64,128], index: 1, kind: input, shape index: {}]   ;;  %s644_s2 = inlined_call_operand.hbm [shape: f32[8,128], index: 2, kind: output, shape index: {}]  }
   0x1   :  { %8 = vsyncpa [#allocation6], 0 }
   0x2   :  { %9 = vsyncpa [#allocation4], 0  ;;  %s525_s9 = smov [#allocation2]   ;;  %s526_s11 = smov [#allocation5]  }
   0x3   :  { %s16_s10 = sshll.u32 %s525_s9, 4  ;;  %s25_s12 = sshll.u32 %s526_s11, 4  ;;  %s17_s10 = int_to_ptr.vmem [resolvable:$true] %s16_s10  ;;  %s560_s12 = int_to_ptr.vmem [resolvable:$true] %s25_s12 }
   0x4   :  { %s453_s15 = scalar_lea.hbm %s642_s0, 32 }
   0x5   :  { %p454_p0 = scmp.ne.s32.totalorder %s642_s0, %s453_s15  ;;  %p457_p1 = scmp.lt.u32.totalorder %s453_s15, %s642_s0 }
   0x7   :  { %p459_p2 = pnand %p457_p1, %p454_p0 }
   0x9   :  { %462 = shalt.err (!%p459_p2)
}
   0xa   :  { %s463_s20 = scalar_lea.vmem %s17_s10, 32  ;;  %p468_p4 = scmp.lt.s32.totalorder %s17_s10, %s17_s10 }
   0xb   :  { %p464_p3 = scmp.ne.s32.totalorder %s17_s10, %s463_s20  ;;  %p469_p5 = scmp.lt.s32.totalorder %s463_s20, %s463_s20 }
   0xd   :  { %p470_p6 = por %p469_p5, %p468_p4 }
   0xf   :  { %p471_p7 = pnand %p470_p6, %p464_p3 }
  0x11   :  { %474 = shalt.err (!%p471_p7)
}
  0x12   :  { %19 = dma.hbm_to_vmem [thread:$0]  %s642_s0, 32, %s17_s10, [#allocation3]  }
  0x13   :  { %s475_s25 = scalar_lea.hbm %s643_s1, 512 }
  0x14   :  { %p476_p8 = scmp.ne.s32.totalorder %s643_s1, %s475_s25  ;;  %p479_p9 = scmp.lt.u32.totalorder %s475_s25, %s643_s1 }
  0x16   :  { %p481_p10 = pnand %p479_p9, %p476_p8 }
  0x18   :  { %484 = shalt.err (!%p481_p10)
}
  0x19   :  { %s485_s30 = scalar_lea.vmem %s560_s12, 512  ;;  %p490_p12 = scmp.lt.s32.totalorder %s560_s12, %s560_s12 }
  0x1a   :  { %p486_p11 = scmp.ne.s32.totalorder %s560_s12, %s485_s30  ;;  %p491_p13 = scmp.lt.s32.totalorder %s485_s30, %s485_s30 }
  0x1c   :  { %p492_p0 = por %p491_p13, %p490_p12 }
  0x1e   :  { %p493_p1 = pnand %p492_p0, %p486_p11 }
  0x20   :  { %496 = shalt.err (!%p493_p1)
}
  0x21   :  { %s527_s0 = smov 64   ;;  %s528_s3 = smov 4  }
  0x22   :  { %31 = dma.hbm_to_vmem [thread:$0]  %s643_s1, 512, %s560_s12, [#allocation6], %s527_s0, %s527_s0, %s528_s3  }
  0x23   :  { %519 = dma.done.wait [#allocation3], 32  }
  0x24   :  { %520 = vsyncadd [#allocation3], 4294967264 }
  0x25   :  { %521 = dma.done.wait [#allocation6], 512  }
  0x26   :  { %522 = vsyncadd [#allocation6], 4294966784  ;;  %v529_v0 = vmov 0.0   ;;  %v39_v1 = vld [vmem:[#allocation2] sm:$0x3]  ;;  %vm530_vm0 = vmmov 0  }
  0x27   :  { %401 = vmatprep.subr.bf16.mxu0 %v529_v0  ;;  %407 = vmatprep.subr.bf16.mxu1 %v529_v0  ;;  %v40_v2 = vunpack.c.l.bf16 %v39_v1  ;;  %s531_s6 = smov 127   ;;  %s532_s7 = smov 126   ;;  %vm57_vm1 = vcmask 1045504   ;;  %vm48_vm2 = vcmask 1043456   ;;  %vm58_vm3 = vcmask 1046528  }
  0x28   :  { %403 = vmatprep.mubr.msk.bf16.mxu0 %vm530_vm0, %v529_v0  ;;  %411 = vmatprep.mubr.msk.bf16.mxu1 %vm530_vm0, %v529_v0  ;;  %v533_v5 = vmov 65535   ;;  %v52_v13 = vld [vmem:[#allocation5] sm:$0xf]  ;;  %vm53_vm4 = vcmask 105472   ;;  %vm116_vm5 = vcmask 1044480   ;;  %v534_v24 = vmov 1.0  }
  0x29   :  { %41 = vrot.lane.b32.xlu0 %v40_v2, %s531_s6  ;;  %v59_v6 = vsel %vm57_vm1, 4294967295, %v533_v5  ;;  %v117_v21 = vsel %vm48_vm2, 4294967295, %v533_v5  ;;  %v111_v27 = vld [vmem:[#allocation5 + $0x8] sm:$0x1]  ;;  %vm112_vm6 = vcmask 203776   ;;  %s535_s1 = smov 124  }
  0x2a   :  { %v600_v10 = vsel %vm58_vm3, %v59_v6, 0  ;;  %v118_v22 = vsel %vm116_vm5, %v117_v21, 0  ;;  %s536_s8 = smov 125   ;;  %s537_s9 = smov 123   ;;  %vm214_vm7 = vcmask 1040384   ;;  %vm216_vm8 = vcmask 1041408  }
  0x2b   :  { %s538_s10 = smov 119   ;;  %s539_s11 = smov 122   ;;  %vm218_vm9 = vcmask 1042432   ;;  %vm280_vm10 = vcmask 56320  }
  0x2c   :  { %s540_s12 = smov 118   ;;  %s541_s13 = smov 117  }
  0x2d   :  { %43 = vrot.lane.b32.xlu0 %v40_v2, %s532_s7  ;;  %s542_s14 = smov 120   ;;  %s543_s15 = smov 121  }
  0x2e   :  { %s544_s16 = smov [#allocation7]  }
  0x2f   :  { %s378_s17 = sshll.u32 %s544_s16, 4  ;;  %s379_s17 = int_to_ptr.vmem [resolvable:$true] %s378_s17 }
  0x30   :  { %s497_s18 = scalar_lea.vmem %s379_s17, 128  ;;  %p502_p3 = scmp.lt.s32.totalorder %s379_s17, %s379_s17 }
  0x31   :  { %p498_p2 = scmp.ne.s32.totalorder %s379_s17, %s497_s18  ;;  %p503_p4 = scmp.lt.s32.totalorder %s497_s18, %s497_s18 }
  0x33   :  { %p504_p5 = por %p503_p4, %p502_p3 }
  0x35   :  { %p505_p6 = pnand %p504_p5, %p498_p2 }
  0x9b   :  { %v42_v3 = vpop.permute.xlu0 %41 }
  0x9c   :  { %v46_v4 = vrot.slane %v42_v3, 4 }
  0x9e   :  { %v49_v8 = vsel %vm48_vm2, %v40_v2, %v46_v4  ;;  %v229_v2 = vld [vmem:[#allocation5 + $0x10] sm:$0x7]  ;;  %v284_v4 = vsel %vm218_vm9, 4294967295, %v533_v5 }
  0x9f   :  { %v44_v7 = vpop.permute.xlu0 %43 }
  0xa0   :  { %v50_v9 = vsel %vm48_vm2, %v44_v7, 1.0 }
  0xa1   :  { %v51_v11 = vpack.c.bf16 %v50_v9, %v49_v8 }
  0xa3   :  { %v62_v12 = vand.u32 %v600_v10, %v51_v11  ;;  %v285_v11 = vsel %vm48_vm2, %v284_v4, 0 }
  0xa5   :  { %402 = vmatpush3.bf16.msra.mxu0 %v62_v12 }
  0xa6   :  { %415 = vmatprep.subr.bf16.mxu0 %v529_v0 }
  0xa8   :  { %404 = vmatmul.mubr.msk.bf16.vlgmr.msra.gmra.mrb[0].mxu0 %vm53_vm4, %v52_v13 }
  0xa9   :  { %417 = vmatprep.mubr.msk.bf16.mxu0 %vm530_vm0, %v529_v0 }
 0x17b   :  { %v98_v14 = vpop.f32.mrb[0].mxu0 }
 0x17c   :  { %v104_v15 = vmax.f32 %v98_v14, 0.0  ;;  %v405_v16 = vpop.f32.mrb[1].mxu0 }
 0x17d   :  { %v101_v17 = vpop.f32.mrb[2].mxu0 }
 0x17e   :  { %105 = vrot.lane.b32.xlu1 %v104_v15, %s531_s6  ;;  %v406_v18 = vpop.f32.mrb[3].mxu0 }
 0x182   :  { %107 = vrot.lane.b32.xlu1 %v104_v15, %s532_s7 }
 0x1f0   :  { %v106_v19 = vpop.permute.xlu1 %105 }
 0x1f1   :  { %v109_v20 = vpack.c.bf16 %v106_v19, %v104_v15  ;;  %v329_v15 = vlaneseq }
 0x1f3   :  { %408 = vmatpush3.bf16.msra.mxu1 %v109_v20  ;;  %v330_v16 = vshrl.u32 %v329_v15, 7 }
 0x1f4   :  { %v108_v23 = vpop.permute.xlu1 %107  ;;  %409 = vmatprep.subr.bf16.mxu1 %v529_v0 }
 0x1f5   :  { %v110_v25 = vpack.c.bf16 %v534_v24, %v108_v23  ;;  %vm331_vm11 = vcmp.lt.s32.totalorder %v330_v16, 4 }
 0x1f7   :  { %v120_v26 = vand.u32 %v118_v22, %v110_v25 }
 0x1f9   :  { %410 = vmatpush3.bf16.msra.mxu1 %v120_v26 }
 0x1fa   :  { %421 = vmatprep.subr.bf16.mxu1 %v529_v0 }
 0x1fc   :  { %412 = vmatmul.mubr.msk.bf16.vlgmr.msra.gmra.mrb[0].mxu1 %vm112_vm6, %v111_v27 }
 0x1fd   :  { %423 = vmatprep.mubr.msk.bf16.mxu1 %vm530_vm0, %v529_v0 }
 0x2cf   :  { %v156_v28 = vpop.f32.mrb[0].mxu1 }
 0x2d0   :  { %164 = vrot.lane.b32.xlu1 %v156_v28, %s532_s7  ;;  %162 = vrot.lane.b32.xlu0 %v156_v28, %s531_s6  ;;  %v413_v29 = vpop.f32.mrb[1].mxu1 }
 0x2d1   :  { %v159_v30 = vpop.f32.mrb[2].mxu1 }
 0x2d2   :  { %v414_v31 = vpop.f32.mrb[3].mxu1 }
 0x2d4   :  { %168 = vrot.lane.b32.xlu1 %v156_v28, %s535_s1  ;;  %166 = vrot.lane.b32.xlu0 %v156_v28, %s536_s8 }
 0x2d8   :  { %170 = vrot.lane.b32.xlu1 %v156_v28, %s537_s9  ;;  %178 = vrot.lane.b32.xlu0 %v156_v28, %s538_s10 }
 0x2dc   :  { %172 = vrot.lane.b32.xlu1 %v156_v28, %s539_s11  ;;  %180 = vrot.lane.b32.xlu0 %v156_v28, %s540_s12 }
 0x2e0   :  { %182 = vrot.lane.b32.xlu1 %v156_v28, %s541_s13  ;;  %176 = vrot.lane.b32.xlu0 %v156_v28, %s542_s14 }
 0x2e4   :  { %174 = vrot.lane.b32.xlu0 %v156_v28, %s543_s15 }
 0x342   :  { %v165_v32 = vpop.permute.xlu1 %164  ;;  %v163_v33 = vpop.permute.xlu0 %162 }
 0x343   :  { %v185_v38 = vrot.slane %v163_v33, 7  ;;  %v188_v39 = vrot.slane %v165_v32, 6 }
 0x345   :  { %v215_v43 = vsel %vm214_vm7, %v156_v28, %v185_v38 }
 0x346   :  { %v169_v34 = vpop.permute.xlu1 %168  ;;  %v167_v35 = vpop.permute.xlu0 %166  ;;  %v217_v48 = vsel %vm216_vm8, %v215_v43, %v188_v39 }
 0x347   :  { %v191_v42 = vrot.slane %v167_v35, 5  ;;  %v194_v45 = vrot.slane %v169_v34, 4 }
 0x349   :  { %v219_v52 = vsel %vm218_vm9, %v217_v48, %v191_v42 }
 0x34a   :  { %v171_v36 = vpop.permute.xlu1 %170  ;;  %v179_v37 = vpop.permute.xlu0 %178  ;;  %v220_v57 = vsel %vm48_vm2, %v219_v52, %v194_v45 }
 0x34b   :  { %v206_v44 = vrot.slane %v179_v37, 7  ;;  %v197_v50 = vrot.slane %v171_v36, 3 }
 0x34d   :  { %v221_v59 = vsel %vm116_vm5, %v220_v57, %v197_v50 }
 0x34e   :  { %v173_v40 = vpop.permute.xlu1 %172  ;;  %v181_v41 = vpop.permute.xlu0 %180 }
 0x34f   :  { %v209_v46 = vrot.slane %v181_v41, 6  ;;  %v200_v54 = vrot.slane %v173_v40, 2 }
 0x351   :  { %v222_v61 = vsel %vm57_vm1, %v221_v59, %v200_v54 }
 0x352   :  { %v183_v47 = vpop.permute.xlu1 %182  ;;  %v177_v49 = vpop.permute.xlu0 %176 }
 0x353   :  { %v212_v51 = vrot.slane %v183_v47, 5  ;;  %v224_v53 = vsel %vm214_vm7, %v177_v49, %v206_v44 }
 0x354   :  { %v225_v55 = vsel %vm216_vm8, %v224_v53, %v209_v46 }
 0x355   :  { %v226_v56 = vsel %vm218_vm9, %v225_v55, %v212_v51 }
 0x356   :  { %v175_v58 = vpop.permute.xlu0 %174  ;;  %v227_v62 = vsel %vm48_vm2, %v226_v56, 1.0 }
 0x357   :  { %v203_v60 = vrot.slane %v175_v58, 1 }
 0x359   :  { %v223_v63 = vsel %vm58_vm3, %v222_v61, %v203_v60 }
 0x35a   :  { %v228_v0 = vpack.c.bf16 %v227_v62, %v223_v63 }
 0x35c   :  { %v234_v1 = vand.u32 %v228_v0, %v600_v10  ;;  %v279_v10 = vld [vmem:[#allocation5 + $0x18] sm:$0xf] }
 0x35e   :  { %416 = vmatpush3.bf16.msra.mxu0 %v234_v1 }
 0x361   :  { %418 = vmatmul.mubr.msk.bf16.vlgmr.msra.gmra.mrb[4].mxu0 %vm53_vm4, %v229_v2 }
 0x434   :  { %v270_v3 = vpop.f32.mrb[4].mxu0 }
 0x435   :  { %v276_v6 = vmax.f32 %v270_v3, 0.0  ;;  %v419_v7 = vpop.f32.mrb[5].mxu0 }
 0x436   :  { %v273_v8 = vpop.f32.mrb[6].mxu0 }
 0x437   :  { %v277_v9 = vsel %vm57_vm1, %v276_v6, 1.0  ;;  %v420_v12 = vpop.f32.mrb[7].mxu0 }
 0x438   :  { %v278_v13 = vpack.c.bf16 %v277_v9, %v277_v9 }
 0x43a   :  { %v287_v14 = vand.u32 %v285_v11, %v278_v13 }
 0x43c   :  { %422 = vmatpush3.bf16.msra.mxu1 %v287_v14 }
 0x43f   :  { %424 = vmatmul.mubr.msk.bf16.vlgmr.msra.gmra.mrb[4].mxu1 %vm280_vm10, %v279_v10 }
 0x512   :  { %v323_v17 = vpop.f32.mrb[4].mxu1 }
 0x513   :  { %v334_v5 = vsel %vm331_vm11, %v323_v17, -1e+30  ;;  %v425_v18 = vpop.f32.mrb[5].mxu1 }
 0x514   :  { %v335_v19 = vrot.slane %v334_v5, 4  ;;  %v326_v20 = vpop.f32.mrb[6].mxu1 }
 0x515   :  { %v426_v21 = vpop.f32.mrb[7].mxu1 }
 0x516   :  { %v336_v22 = vmax.f32 %v334_v5, %v335_v19 }
 0x518   :  { %v337_v23 = vrot.slane %v336_v22, 2 }
 0x51a   :  { %v338_v24 = vmax.f32 %v336_v22, %v337_v23 }
 0x51c   :  { %v339_v25 = vrot.slane %v338_v24, 1 }
 0x51e   :  { %v340_v26 = vmax.f32 %v338_v24, %v339_v25 }
 0x520   :  { %v341_v27 = vsub.f32 %v334_v5, %v340_v26 }
 0x522   :  { %v342_v28 = vmul.f32 1.442695, %v341_v27 }
 0x524   :  { %447 = vpow2.f32 %v342_v28 }
 0x52e   :  { %v448_v29 = vpop.eup %447 }
 0x52f   :  { %v344_v30 = vrot.slane %v448_v29, 4 }
 0x531   :  { %v345_v31 = vadd.f32 %v448_v29, %v344_v30 }
 0x533   :  { %v346_v32 = vrot.slane %v345_v31, 2 }
 0x535   :  { %v347_v33 = vadd.f32 %v346_v32, %v345_v31 }
 0x537   :  { %v348_v34 = vrot.slane %v347_v33, 1 }
 0x539   :  { %v349_v35 = vadd.f32 %v348_v34, %v347_v33 }
 0x53b   :  { %449 = vrcp.f32 %v349_v35 }
 0x545   :  { %v450_v36 = vpop.eup %449 }
 0x546   :  { %v351_v37 = vmul.f32 %v450_v36, %v448_v29 }
 0x548   :  { %v352_v38 = vrot.slane %v351_v37, 4 }
 0x54a   :  { %v353_v39 = vadd.f32 %v352_v38, %v351_v37 }
 0x54c   :  { %v354_v40 = vrot.slane %v353_v39, 2 }
 0x54e   :  { %v355_v41 = vadd.f32 %v354_v40, %v353_v39 }
 0x550   :  { %v356_v42 = vrot.slane %v355_v41, 1 }
 0x552   :  { %v357_v43 = vadd.f32 %v356_v42, %v355_v41 }
 0x554   :  { %v358_v44 = vmul.f32 0.25, %v357_v43 }
 0x556   :  { %v359_v45 = vsub.f32 %v351_v37, %v358_v44 }
 0x558   :  { %v360_v46 = vsel %vm331_vm11, %v359_v45, 0.0 }
 0x559   :  { %v361_v47 = vand.u32 2147483647, %v360_v46 }
 0x55b   :  { %v362_v48 = vrot.slane %v361_v47, 4 }
 0x55d   :  { %v363_v49 = vadd.f32 %v362_v48, %v361_v47 }
 0x55f   :  { %v364_v50 = vrot.slane %v363_v49, 2 }
 0x561   :  { %v365_v51 = vadd.f32 %v364_v50, %v363_v49 }
 0x563   :  { %v366_v52 = vrot.slane %v365_v51, 1 }
 0x565   :  { %v367_v53 = vadd.f32 %v366_v52, %v365_v51 }
 0x567   :  { %v368_v54 = vmax.f32 %v367_v53, 1e-30 }
 0x569   :  { %451 = vrcp.f32 %v368_v54 }
 0x573   :  { %v452_v55 = vpop.eup %451 }
 0x574   :  { %v370_v56 = vmul.f32 %v452_v55, %v360_v46 }
 0x576   :  { %371 = vst [vmem:[#allocation7] sm:$0xff] %v370_v56 }
 0x577   :  { %508 = shalt.err (!%p505_p6)
}
 0x578   :  { %s509_s21 = scalar_lea.hbm %s644_s2, 128 }
 0x579   :  { %p510_p7 = scmp.ne.s32.totalorder %s644_s2, %s509_s21  ;;  %p513_p8 = scmp.lt.u32.totalorder %s509_s21, %s644_s2 }
 0x57b   :  { %p515_p9 = pnand %p513_p8, %p510_p7 }
 0x57d   :  { %518 = shalt.err (!%p515_p9)
}
 0x57e   :  { %381 = dma.vmem_to_hbm [thread:$0]  %s379_s17, 128, %s644_s2, [#allocation4]  }
 0x57f   :  { %523 = dma.done.wait [#allocation4], 128  }
 0x580   :  { %524 = vsyncadd [#allocation4], 4294967168 }
 0x581   :  { %385 = vsyncpa [#allocation3], 1 }
 0x582   :  { %386 = vsyncpa [#allocation6], 1 }
 0x583   :  { %387 = vsyncpa [#allocation4], 1 }

</bundles_post_ra>
